<compile_context>
chip_gen: v7x
topology: tpu7x:2x2x1
jax: 0.10.0
libtpu: 0.0.40
codegen_flags: <defaults>
</compile_context>

<pallas_src>
import jax
import jax.numpy as jnp
from jax.experimental import pallas as pl
from jax.experimental.pallas import tpu as pltpu


def _nearest_to_1x1_kernel(x_ref, o_ref):
    # x_ref: (TILE_NC, LANE) VMEM tile; only lane 0 of each row is meaningful.
    # o_ref: (TILE_NC, 1).
    # Nearest-neighbor down-interpolation to spatial size 1 picks input index 0.
    o_ref[...] = x_ref[:, 0:1]


def global_average_pooling(x: jax.Array, tile_nc: int = 2048) -> jax.Array:
    """Equivalent of GlobalAveragePooling.forward: F.interpolate(x, size=1) (nearest)."""
    n, c, h, w = x.shape
    nc, hw = n * c, h * w

    # Row-major flatten: column 0 of each (n, c) row is spatial position (0, 0).
    # This reshape is a metadata-only collapse in XLA (no copy).
    x2d = x.reshape(nc, hw)

    # Fetch only the first 128-lane slab of each row.  Legal block shapes:
    #   hw >= 128 -> lane block 128 (divisible by 128; index_map always picks
    #                lane-block 0, which is fully in-bounds even if 128 ∤ hw),
    #   hw <  128 -> lane block equals the full lane extent.
    lane = hw if hw < 128 else 128

    # Tile NC so each step's blocks are small and the pipeline double-buffers.
    # If nc <= tile_nc the block equals the full array dims (always legal);
    # otherwise tile_nc=2048 is a multiple of every sublane packing (8/16/32),
    # and Pallas masks the final partial block.
    tile_nc = min(tile_nc, nc)
    grid = (pl.cdiv(nc, tile_nc),)

    out2d = pl.pallas_call(
        _nearest_to_1x1_kernel,
        out_shape=jax.ShapeDtypeStruct((nc, 1), x.dtype),
        grid=grid,
        in_specs=[pl.BlockSpec((tile_nc, lane), lambda i: (i, 0))],
        out_specs=pl.BlockSpec((tile_nc, 1), lambda i: (i, 0)),
        compiler_params=pltpu.CompilerParams(
            dimension_semantics=("parallel",)),
    )(x2d)

    return out2d.reshape(n, c, 1, 1)


if __name__ == "__main__":
    key = jax.random.PRNGKey(0)
    x = jax.random.normal(key, (2, 4, 16, 16), dtype=jnp.float32)

    out = global_average_pooling(x)
    out = jax.block_until_ready(out)

    # Reference: exact PyTorch F.interpolate(x, size=1) semantics (nearest).
    ref = x[:, :, 0:1, 0:1]

    assert out.shape == (2, 4, 1, 1), out.shape
    assert out.dtype == x.dtype, out.dtype
    assert jnp.array_equal(out, ref), "mismatch vs nearest-interpolate reference"

    print("KERNEL_OK")
</pallas_src>

<mosaic_0001>
module attributes {stable_mosaic.version = 11 : i64} {
  func.func @_nearest_to_1x1_kernel(%arg0: i32, %arg1: memref<8x128xf32, #tpu.memory_space<vmem>>, %arg2: memref<8x1xf32, #tpu.memory_space<vmem>>) attributes {dimension_semantics = [#tpu.dimension_semantics<parallel>], iteration_bounds = array<i64: 1>, scalar_prefetch = 0 : i64, scratch_operands = 0 : i64, tpu.core_type = #tpu.core_type<tc>, window_params = [{transform_indices = @transform_0, window_bounds = array<i64: 8, 128>}, {transform_indices = @transform_1, window_bounds = array<i64: 8, 1>}]} {
    %c0 = arith.constant 0 : index
    %c0_0 = arith.constant 0 : index
    %0 = vector.load %arg1[%c0, %c0_0] : memref<8x128xf32, #tpu.memory_space<vmem>>, vector<8x1xf32>
    %c0_1 = arith.constant 0 : index
    %c0_2 = arith.constant 0 : index
    %1 = vector.load %arg2[%c0_1, %c0_2] : memref<8x1xf32, #tpu.memory_space<vmem>>, vector<8x1xf32>
    tpu.vector_store %arg2[%c0_1, %c0_2], %0 {strides = array<i32>} : memref<8x1xf32, #tpu.memory_space<vmem>>, vector<8x1xf32>,
    return
  }
  func.func @transform_0(%arg0: i32) -> (i32, i32) {
    %c0_i32 = arith.constant 0 : i32
    %c0_i32_0 = arith.constant 0 : i32
    return %arg0, %c0_i32 : i32, i32
  }
  func.func @transform_1(%arg0: i32) -> (i32, i32) {
    %c0_i32 = arith.constant 0 : i32
    %c0_i32_0 = arith.constant 0 : i32
    return %arg0, %c0_i32 : i32, i32
  }
}

</mosaic_0001>

<bundles_post_ra>
// kernel: tpu_custom_call.1
= control target key start
LH: loop header
LB: loop body
LE: loop exit
PB: predicated region body
PF: predicated region fallthrough
CT: control target
= control target key end

     0   :  { %6 = vsyncpa [#allocation3], 0  ;;  %s53_s6 = smov [#allocation2]   ;;  %s82_s0 = inlined_call_operand.hbm [shape: f32[8,256], index: 0, kind: input, shape index: {}]   ;;  %s83_s1 = inlined_call_operand.vmem [shape: f32[8,1], index: 1, kind: output, shape index: {}]  }
   0x1   :  { %s13_s7 = sshll.u32 %s53_s6, 4  ;;  %s29_s10 = scalar_lea.hbm %s82_s0, 128  ;;  %s14_s7 = int_to_ptr.vmem [resolvable:$true] %s13_s7 }
   0x2   :  { %p30_p0 = scmp.ne.s32.totalorder %s82_s0, %s29_s10  ;;  %s31_s15 = scalar_lea.hbm %s82_s0, 256 }
   0x3   :  { %p32_p1 = scmp.lt.u32.totalorder %s31_s15, %s29_s10  ;;  %p33_p2 = scmp.lt.u32.totalorder %s29_s10, %s82_s0 }
   0x5   :  { %p34_p3 = por %p33_p2, %p32_p1 }
   0x7   :  { %p35_p4 = pnand %p34_p3, %p30_p0 }
   0x9   :  { %38 = shalt.err (!%p35_p4)
}
   0xa   :  { %s39_s18 = scalar_lea.vmem %s14_s7, 128  ;;  %p44_p6 = scmp.lt.s32.totalorder %s14_s7, %s14_s7 }
   0xb   :  { %p40_p5 = scmp.ne.s32.totalorder %s14_s7, %s39_s18  ;;  %p45_p7 = scmp.lt.s32.totalorder %s39_s18, %s39_s18 }
   0xd   :  { %p46_p8 = por %p45_p7, %p44_p6 }
   0xf   :  { %p47_p9 = pnand %p46_p8, %p40_p5 }
  0x11   :  { %50 = shalt.err (!%p47_p9)
}
  0x12   :  { %16 = dma.hbm_to_vmem [thread:$0]  %s82_s0, 128, %s14_s7, [#allocation3]  }
  0x13   :  { %51 = dma.done.wait [#allocation3], 128  }
  0x14   :  { %52 = vsyncadd [#allocation3], 4294967168  ;;  %vm21_vm0 = vcmask 7168   ;;  %v20_v0 = vld [vmem:[#allocation2] sm:$0xff] }
  0x15   :  { %22 = vst.msk [vmem:[%s83_s1] sm:$0xff] %vm21_vm0, %v20_v0 }
  0x16   :  { %27 = vsyncpa [#allocation3], 1 }

</bundles_post_ra>
